<compile_context>
chip_gen: v7x
topology: tpu7x:2x2x1
jax: 0.10.0
libtpu: 0.0.40
codegen_flags: <defaults>
</compile_context>

<pallas_src>
import functools

import jax
import jax.numpy as jnp
from jax import lax
from jax.experimental import pallas as pl
from jax.experimental.pallas import tpu as pltpu

_REPR_DIM = 256          # fixed in the PyTorch module
_HALF = _REPR_DIM // 2   # 128 lanes per Box-Muller branch (lane-aligned halves)


def _mix32(x):
    """lowbias32-style 32-bit avalanche hash — pure VPU integer ops."""
    x = x ^ (x >> jnp.uint32(16))
    x = x * jnp.uint32(0x7FEB352D)
    x = x ^ (x >> jnp.uint32(15))
    x = x * jnp.uint32(0x846CA68B)
    x = x ^ (x >> jnp.uint32(16))
    return x


def _bits_to_unit(bits):
    """uint32 bits -> float32 uniform in [0, 1 - 2^-23] via the top 23 bits."""
    return (bits >> jnp.uint32(9)).astype(jnp.int32).astype(jnp.float32) * jnp.float32(
        1.0 / (1 << 23))


def _randn_kernel(seed_ref, o_ref):
    """Fill o_ref (rows, 256) with i.i.d. N(0,1) samples (counter-based RNG)."""
    rows, cols = o_ref.shape
    half = cols // 2

    # Global pair counters — independent of the grid decomposition, so the
    # result is identical for 1 or 2 blocks and for any core assignment.
    row0 = pl.program_id(0) * rows
    row_ids = lax.broadcasted_iota(jnp.int32, (rows, half), 0) + row0
    col_ids = lax.broadcasted_iota(jnp.int32, (rows, half), 1)
    pair_idx = (row_ids * half + col_ids).astype(jnp.uint32)

    # Decorrelate the seed from the counter range with a full mix round and a
    # large odd multiplier (addresses the seed+program_id correlation concern).
    key = _mix32(seed_ref[0].astype(jnp.uint32) * jnp.uint32(0x9E3779B9)
                 + jnp.uint32(1))

    # Two disjoint counter streams (even / odd) -> two independent uniforms.
    ctr = pair_idx * jnp.uint32(2)
    b1 = _mix32(ctr ^ key)
    b2 = _mix32((ctr + jnp.uint32(1)) ^ key)

    u1 = _bits_to_unit(b1)            # [0, 1 - 2^-23]
    u2 = _bits_to_unit(b2)

    # Box-Muller, BOTH branches: each (u1, u2) pair yields two N(0,1) samples.
    # 1 - u1 in [2^-23, 1], so log never sees 0.
    r = jnp.sqrt(jnp.float32(-2.0) * jnp.log(jnp.float32(1.0) - u1))
    theta = jnp.float32(2.0 * jnp.pi) * u2
    z = jnp.concatenate([r * jnp.cos(theta), r * jnp.sin(theta)], axis=-1)
    o_ref[...] = z.astype(o_ref.dtype)


@functools.partial(jax.jit, static_argnames=("bs", "n_steps"))
def _mock_forward(seed, *, bs, n_steps):
    total_rows = bs * n_steps
    # Collapse the grid: one big block, or two "parallel" blocks (one per v7x
    # TensorCore) when the split keeps each block sublane-aligned (rows % 8 == 0).
    if total_rows % 2 == 0 and (total_rows // 2) % 8 == 0:
        n_blocks = 2
    else:
        n_blocks = 1
    rows_per_block = total_rows // n_blocks
    n = total_rows * _REPR_DIM

    out2d = pl.pallas_call(
        _randn_kernel,
        out_shape=jax.ShapeDtypeStruct((total_rows, _REPR_DIM), jnp.float32),
        grid=(n_blocks,),
        # Seed is a tiny scalar array: keep it in SMEM, no blocking.
        in_specs=[pl.BlockSpec(memory_space=pltpu.MemorySpace.SMEM)],
        # Lane-dense, (8,128)-aligned output slab -> unmasked vector stores.
        out_specs=pl.BlockSpec((rows_per_block, _REPR_DIM), lambda i: (i, 0)),
        compiler_params=pltpu.CompilerParams(
            dimension_semantics=("parallel",),   # megacore-shard on v7x
        ),
        cost_estimate=pl.CostEstimate(
            flops=8 * n, transcendentals=2 * n, bytes_accessed=4 * n + 4),
    )(seed)
    # Row-major contiguous reshape: free, done outside the kernel.
    return out2d.reshape(bs, n_steps, _REPR_DIM)


class MockModelPallas:
    """Pallas/TPU port of the PyTorch MockModel (forward == randn(bs, T, 256))."""

    def __init__(self, bs=64, n_steps=17, output_dim=256, seed=0):
        self.bs = bs
        self.n_steps = n_steps
        self.repr_dim = _REPR_DIM      # fixed in the PyTorch module
        self.seed = seed

    def __call__(self, states, actions):
        # The reference forward ignores `states` / `actions`; we do the same and
        # deliberately do not feed them to the kernel (no useless HBM traffic).
        del states, actions
        seed = jnp.asarray([self.seed], dtype=jnp.int32)
        return _mock_forward(seed, bs=self.bs, n_steps=self.n_steps)


if __name__ == "__main__":
    key = jax.random.PRNGKey(0)
    k_states, k_actions = jax.random.split(key)

    # Small shapes consistent with the module: output is (bs, n_steps, 256);
    # states / actions are unused by the forward but constructed deterministically.
    B, T, C, H, W, A = 2, 8, 2, 16, 16, 2
    states = jax.random.normal(k_states, (B, T, C, H, W), jnp.float32)
    actions = jax.random.normal(k_actions, (B, T - 1, A), jnp.float32)

    model = MockModelPallas(bs=B, n_steps=T, seed=0)
    out = jax.block_until_ready(model(states, actions))

    # Shape / dtype / finiteness.
    assert out.shape == (B, T, 256), out.shape
    assert out.dtype == jnp.float32, out.dtype
    assert bool(jnp.all(jnp.isfinite(out))), "non-finite samples"

    # Distributional sanity over 2*8*256 = 4096 i.i.d. N(0,1) samples.
    mean = float(jnp.mean(out))
    std = float(jnp.std(out))
    assert abs(mean) < 0.1, f"mean off: {mean}"
    assert 0.85 < std < 1.15, f"std off: {std}"

    # Distinct counters per row -> batch rows differ; fixed seed -> deterministic.
    assert bool(jnp.any(out[0] != out[1])), "batch rows identical"
    out2 = jax.block_until_ready(model(states, actions))
    assert bool(jnp.all(out == out2)), "not deterministic for fixed seed"

    print("KERNEL_OK")
</pallas_src>

<mosaic_0001>
module attributes {stable_mosaic.version = 11 : i64} {
  func.func @_randn_kernel(%arg0: i32, %arg1: memref<1xi32, #tpu.memory_space<smem>>, %arg2: memref<8x256xf32, #tpu.memory_space<vmem>>) attributes {dimension_semantics = [#tpu.dimension_semantics<parallel>], iteration_bounds = array<i64: 2>, scalar_prefetch = 0 : i64, scratch_operands = 0 : i64, tpu.core_type = #tpu.core_type<tc>, window_params = [{transform_indices = @transform_0, window_bounds = array<i64: 1>}, {transform_indices = @transform_1, window_bounds = array<i64: 8, 256>}]} {
    %c8_i32 = arith.constant 8 : i32
    %0 = arith.muli %arg0, %c8_i32 : i32
    %1 = tpu.iota {dimensions = array<i32: 0>} : vector<8x128xi32>
    %2 = vector.broadcast %0 : i32 to vector<8x128xi32>
    %3 = arith.addi %1, %2 : vector<8x128xi32>
    %4 = tpu.iota {dimensions = array<i32: 1>} : vector<8x128xi32>
    %c128_i32 = arith.constant 128 : i32
    %5 = vector.broadcast %c128_i32 : i32 to vector<8x128xi32>
    %6 = arith.muli %3, %5 : vector<8x128xi32>
    %7 = arith.addi %6, %4 : vector<8x128xi32>
    %c0 = arith.constant 0 : index
    %8 = memref.load %arg1[%c0] : memref<1xi32, #tpu.memory_space<smem>>
    %c-1640531527_i32 = arith.constant -1640531527 : i32
    %9 = arith.muli %8, %c-1640531527_i32 : i32
    %c1_i32 = arith.constant 1 : i32
    %10 = arith.addi %9, %c1_i32 : i32
    %c16_i32 = arith.constant 16 : i32
    %11 = arith.shrui %10, %c16_i32 : i32
    %12 = arith.xori %10, %11 : i32
    %c2146121005_i32 = arith.constant 2146121005 : i32
    %13 = arith.muli %12, %c2146121005_i32 : i32
    %c15_i32 = arith.constant 15 : i32
    %14 = arith.shrui %13, %c15_i32 : i32
    %15 = arith.xori %13, %14 : i32
    %c-2073254261_i32 = arith.constant -2073254261 : i32
    %16 = arith.muli %15, %c-2073254261_i32 : i32
    %c16_i32_0 = arith.constant 16 : i32
    %17 = arith.shrui %16, %c16_i32_0 : i32
    %18 = arith.xori %16, %17 : i32
    %c2_i32 = arith.constant 2 : i32
    %19 = vector.broadcast %c2_i32 : i32 to vector<8x128xi32>
    %20 = arith.muli %7, %19 : vector<8x128xi32>
    %21 = vector.broadcast %18 : i32 to vector<8x128xi32>
    %22 = arith.xori %20, %21 : vector<8x128xi32>
    %c16_i32_1 = arith.constant 16 : i32
    %23 = vector.broadcast %c16_i32_1 : i32 to vector<8x128xi32>
    %24 = arith.shrui %22, %23 : vector<8x128xi32>
    %25 = arith.xori %22, %24 : vector<8x128xi32>
    %c2146121005_i32_2 = arith.constant 2146121005 : i32
    %26 = vector.broadcast %c2146121005_i32_2 : i32 to vector<8x128xi32>
    %27 = arith.muli %25, %26 : vector<8x128xi32>
    %c15_i32_3 = arith.constant 15 : i32
    %28 = vector.broadcast %c15_i32_3 : i32 to vector<8x128xi32>
    %29 = arith.shrui %27, %28 : vector<8x128xi32>
    %30 = arith.xori %27, %29 : vector<8x128xi32>
    %c-2073254261_i32_4 = arith.constant -2073254261 : i32
    %31 = vector.broadcast %c-2073254261_i32_4 : i32 to vector<8x128xi32>
    %32 = arith.muli %30, %31 : vector<8x128xi32>
    %c16_i32_5 = arith.constant 16 : i32
    %33 = vector.broadcast %c16_i32_5 : i32 to vector<8x128xi32>
    %34 = arith.shrui %32, %33 : vector<8x128xi32>
    %35 = arith.xori %32, %34 : vector<8x128xi32>
    %c1_i32_6 = arith.constant 1 : i32
    %36 = vector.broadcast %c1_i32_6 : i32 to vector<8x128xi32>
    %37 = arith.addi %20, %36 : vector<8x128xi32>
    %38 = vector.broadcast %18 : i32 to vector<8x128xi32>
    %39 = arith.xori %37, %38 : vector<8x128xi32>
    %c16_i32_7 = arith.constant 16 : i32
    %40 = vector.broadcast %c16_i32_7 : i32 to vector<8x128xi32>
    %41 = arith.shrui %39, %40 : vector<8x128xi32>
    %42 = arith.xori %39, %41 : vector<8x128xi32>
    %c2146121005_i32_8 = arith.constant 2146121005 : i32
    %43 = vector.broadcast %c2146121005_i32_8 : i32 to vector<8x128xi32>
    %44 = arith.muli %42, %43 : vector<8x128xi32>
    %c15_i32_9 = arith.constant 15 : i32
    %45 = vector.broadcast %c15_i32_9 : i32 to vector<8x128xi32>
    %46 = arith.shrui %44, %45 : vector<8x128xi32>
    %47 = arith.xori %44, %46 : vector<8x128xi32>
    %c-2073254261_i32_10 = arith.constant -2073254261 : i32
    %48 = vector.broadcast %c-2073254261_i32_10 : i32 to vector<8x128xi32>
    %49 = arith.muli %47, %48 : vector<8x128xi32>
    %c16_i32_11 = arith.constant 16 : i32
    %50 = vector.broadcast %c16_i32_11 : i32 to vector<8x128xi32>
    %51 = arith.shrui %49, %50 : vector<8x128xi32>
    %52 = arith.xori %49, %51 : vector<8x128xi32>
    %c9_i32 = arith.constant 9 : i32
    %53 = vector.broadcast %c9_i32 : i32 to vector<8x128xi32>
    %54 = arith.shrui %35, %53 : vector<8x128xi32>
    %55 = arith.sitofp %54 : vector<8x128xi32> to vector<8x128xf32>
    %cst = arith.constant 1.1920929E-7 : f32
    %56 = vector.broadcast %cst : f32 to vector<8x128xf32>
    %57 = arith.mulf %55, %56 : vector<8x128xf32>
    %c9_i32_12 = arith.constant 9 : i32
    %58 = vector.broadcast %c9_i32_12 : i32 to vector<8x128xi32>
    %59 = arith.shrui %52, %58 : vector<8x128xi32>
    %60 = arith.sitofp %59 : vector<8x128xi32> to vector<8x128xf32>
    %cst_13 = arith.constant 1.1920929E-7 : f32
    %61 = vector.broadcast %cst_13 : f32 to vector<8x128xf32>
    %62 = arith.mulf %60, %61 : vector<8x128xf32>
    %cst_14 = arith.constant 1.000000e+00 : f32
    %63 = vector.broadcast %cst_14 : f32 to vector<8x128xf32>
    %64 = arith.subf %63, %57 : vector<8x128xf32>
    %65 = math.log %64 : vector<8x128xf32>
    %cst_15 = arith.constant -2.000000e+00 : f32
    %66 = vector.broadcast %cst_15 : f32 to vector<8x128xf32>
    %67 = arith.mulf %66, %65 : vector<8x128xf32>
    %68 = math.sqrt %67 : vector<8x128xf32>
    %cst_16 = arith.constant 6.28318548 : f32
    %69 = vector.broadcast %cst_16 : f32 to vector<8x128xf32>
    %70 = arith.mulf %69, %62 : vector<8x128xf32>
    %71 = math.cos %70 : vector<8x128xf32>
    %72 = arith.mulf %68, %71 : vector<8x128xf32>
    %73 = math.sin %70 : vector<8x128xf32>
    %74 = arith.mulf %68, %73 : vector<8x128xf32>
    %75 = tpu.concatenate %72, %74 in 1 : vector<8x128xf32>, vector<8x128xf32> -> vector<8x256xf32>
    %c0_17 = arith.constant 0 : index
    %c0_18 = arith.constant 0 : index
    %76 = vector.load %arg2[%c0_17, %c0_18] : memref<8x256xf32, #tpu.memory_space<vmem>>, vector<8x256xf32>
    tpu.vector_store %arg2[%c0_17, %c0_18], %75 {strides = array<i32>} : memref<8x256xf32, #tpu.memory_space<vmem>>, vector<8x256xf32>,
    return
  }
  func.func @transform_0(%arg0: i32) -> i32 {
    %c0_i32 = arith.constant 0 : i32
    %c0_i32_0 = arith.constant 0 : i32
    return %c0_i32 : i32
  }
  func.func @transform_1(%arg0: i32) -> (i32, i32) {
    %c0_i32 = arith.constant 0 : i32
    %c0_i32_0 = arith.constant 0 : i32
    return %arg0, %c0_i32 : i32, i32
  }
}

</mosaic_0001>

<bundles_post_ra>
// kernel: _mock_forward.1
= control target key start
LH: loop header
LB: loop body
LE: loop exit
PB: predicated region body
PF: predicated region fallthrough
CT: control target
= control target key end

     0   :  { %s712_s0 = inlined_call_operand.<no memory space> [shape: s32[1], index: 0, kind: input, shape index: {}]   ;;  %s713_s1 = inlined_call_operand.hbm [shape: f32[16,256], index: 1, kind: output, shape index: {}]  }
   0x1   :  { %6 = sst [smem:[#allocation2]] %s712_s0 }
   0x2   :  { %7 = vsyncpa [#allocation4], 0 }
   0x3   :  { %9 = vsyncpa [#allocation4 + $0x1], 0  ;;  %s588_s8 = smov 0   ;;  %s590_s9 = smov 0  }
   0x4   :  { %s592_s10 = smov 0   ;;  %s594_s11 = smov 0  }
   0x5 LB: > { %s609_s0 = sadd.s32 4294967295, %s566_s11   ;;  %s428_s12 = sadd.s32 4294967294, %s566_s11   ;;  %s566_s11 = sphi %s594_s11, %s719_s11   ;;  %s562_s10 = sphi %s592_s10, %s718_s10   ;;  %s558_s9 = sphi %s590_s9, %s717_s9   ;;  %s554_s8 = sphi %s588_s8, %s716_s8  }
   0x6   : > { %s613_s13 = sadd.s32 1, %s566_s11   ;;  %s43_s14 = sadd.s32 1, %s562_s10 }
   0x7   : > { %s40_s15 = ssub.s32 %s566_s11, %s613_s13  ;;  %p53_p0 = scmp.ne.s32.totalorder %s562_s10, %s558_s9 }
   0x8   : > { %p41_p1 = scmp.eq.s32.totalorder %s40_s15, 0  ;;  %p54_p2 = scmp.eq.s32.totalorder %s609_s0, 1 }
   0x9   : > { %p59_p3 = scmp.ne.s32.totalorder %s558_s9, %s554_s8  ;;  %p60_p4 = scmp.eq.s32.totalorder %s428_s12, 1 }
   0xa   : > { %s624_s16 = scalar_select %p41_p1, %s562_s10, %s43_s14  }
   0xb   : > { %p626_p5 = por %p54_p2, %p53_p0  ;;  %p630_p6 = por %p60_p4, %p59_p3 }
   0xc   : > { %p430_p7 = scmp.ge.s32.totalorder %s566_s11, 1  ;;  %p81_p8 = scmp.lt.s32.totalorder %s566_s11, 3 }
   0xe   : > { %p82_p9 = pnand %p430_p7, %p81_p8 }
   0xf   : > { %s432_s19 = sshll.u32 (!%p82_p9), %s609_s0, 3  ;;  %v97_v0 = vlaneseq (!%p82_p9)  ;;  %s105_s20 = sld [smem:[#allocation2]] (!%p82_p9)  ;;  %v568_v40 = vmov (!%p82_p9), 683565275   ;;  %v569_v42 = vmov (!%p82_p9), 2475754826  }
  0x10   : > { %85 = sbr.rel (%p82_p9) target bundleno = 157 (0x9d), region = 24  ;;  %v99_v1 = vstv (!%p82_p9), %s432_s19  ;;  %v570_v44 = vmov (!%p82_p9), 2131351028   ;;  %v571_v49 = vmov (!%p82_p9), 2102212464   ;;  %s93_s2 = sand.u32 (!%p82_p9), 1, %s558_s9  }
  0x11   : > { %v98_v2 = vshrl.u32 (!%p82_p9), %v97_v0, 7  ;;  %v102_v4 = vand.u32 (!%p82_p9), 127, %v97_v0  ;;  %v572_v54 = vmov (!%p82_p9), 920167782   ;;  %v573_v60 = vmov (!%p82_p9), 1326507024  }
  0x12   : > { %s431_s3 = sshll.u32 (!%p82_p9), %s93_s2, 4  ;;  %s446_s6 = sshll.u32 (!%p82_p9), %s609_s0, 8 }
  0x13   : > { %v100_v3 = vadd.s32 (!%p82_p9), %v99_v1, %v98_v2  ;;  %s95_s4 = scalar_lea.vmem (!%p82_p9), [#allocation3], %s431_s3  ;;  %s670_s14 = scalar_lea.hbm (!%p82_p9), %s713_s1, %s446_s6 }
  0x14   : > { %s381_s5 = sshll.u32 (!%p82_p9), %s95_s4, 4  ;;  %s367_s0 = scalar_lea.sflag (!%p82_p9), [#allocation4], %s93_s2  ;;  %s665_s5 = int_to_ptr.vmem [resolvable:$true] %s381_s5 }
  0x15   : > { %v103_v5 = vmul.u32 (!%p82_p9), 128, %v100_v3  ;;  %s106_s21 = smul.u32 (!%p82_p9), 2654435769, %s105_s20  ;;  %s504_s15 = scalar_lea.vmem (!%p82_p9), %s665_s5, 256 }
  0x16   : > { %p505_p10 = scmp.ne.s32.totalorder (!%p82_p9), %s665_s5, %s504_s15  ;;  %s574_s19 = smov (!%p82_p9), [#allocation3]  }
  0x17   : > { %v104_v6 = vadd.s32 %v103_v5, %v102_v4  ;;  %s107_s22 = sadd.s32 1, %s106_s21  ;;  %s508_s20 = sshll.u32 %s574_s19, 4  ;;  %s509_s20 = int_to_ptr.vmem [resolvable:$false] %s508_s20 }
  0x18   : > { %s108_s23 = sshrl.u32 %s107_s22, 16  ;;  %p506_p11 = pnand %p505_p10, %p626_p5 }
  0x19   : > { %s109_s24 = sxor.u32 %s108_s23, %s107_s22  ;;  %v116_v7 = vmul.u32 2, %v104_v6  ;;  %s510_s21 = scalar_lea.vmem %s509_s20, 512 }
  0x1a   : > { %s110_s25 = smul.u32 2146121005, %s109_s24  ;;  %p507_p12 = pneg %p506_p11 }
  0x1b   : > { %v127_v8 = vadd.s32 1, %v116_v7  ;;  %p511_p13 = scmp.lt.s32.totalorder %s665_s5, %s509_s20  ;;  %p512_p0 = scmp.lt.s32.totalorder %s510_s21, %s504_s15 }
  0x1c   : > { %s111_s26 = sshrl.u32 %s110_s25, 15 }
  0x1d   : > { %s112_s27 = sxor.u32 %s111_s26, %s110_s25  ;;  %p513_p1 = por %p512_p0, %p511_p13 }
  0x1e   : > { %s113_s28 = smul.u32 2221713035, %s112_s27 }
  0x1f   : > { %p514_p2 = pnand %p513_p1, %p507_p12 }
  0x20   : > { %s114_s29 = sshrl.u32 %s113_s28, 16 }
  0x21   : > { %s115_s30 = sxor.u32 %s114_s29, %s113_s28 }
  0x22   : > { %v117_v9 = vstv %s115_s30 }
  0x23   : > { %v128_v10 = vxor.u32 %v127_v8, %v117_v9  ;;  %v118_v16 = vxor.u32 %v117_v9, %v116_v7 }
  0x25   : > { %v129_v11 = vshrl.u32 %v128_v10, 16  ;;  %v119_v19 = vshrl.u32 %v118_v16, 16 }
  0x27   : > { %v130_v12 = vxor.u32 %v129_v11, %v128_v10  ;;  %v120_v22 = vxor.u32 %v119_v19, %v118_v16 }
  0x29   : > { %v131_v13 = vmul.u32 2146121005, %v130_v12  ;;  %v121_v25 = vmul.u32 2146121005, %v120_v22 }
  0x2b   : > { %v132_v14 = vshrl.u32 %v131_v13, 15  ;;  %v122_v28 = vshrl.u32 %v121_v25, 15 }
  0x2d   : > { %v133_v15 = vxor.u32 %v132_v14, %v131_v13  ;;  %v123_v31 = vxor.u32 %v122_v28, %v121_v25 }
  0x2f   : > { %v134_v17 = vmul.u32 2221713035, %v133_v15  ;;  %v124_v34 = vmul.u32 2221713035, %v123_v31 }
  0x31   : > { %v135_v18 = vshrl.u32 %v134_v17, 16  ;;  %v125_v46 = vshrl.u32 %v124_v34, 16 }
  0x33   : > { %v136_v20 = vxor.u32 %v135_v18, %v134_v17  ;;  %v126_v62 = vxor.u32 %v125_v46, %v124_v34 }
  0x35   : > { %v140_v21 = vshrl.u32 %v136_v20, 9  ;;  %v137_v10 = vshrl.u32 %v126_v62, 9 }
  0x37   : > { %v141_v23 = vcvt.s32.f32 %v140_v21  ;;  %v138_v20 = vcvt.s32.f32 %v137_v10 }
  0x39   : > { %v142_v24 = vmul.f32 1.1920929e-07, %v141_v23 }
  0x3b   : > { %v637_v26 = vmul.f32 6.2831855, %v142_v24  ;;  %v139_v24 = vmul.f32 1.1920929e-07, %v138_v20 }
  0x3d   : > { %v158_v27 = vand.u32 2139095040, %v637_v26  ;;  %v155_v33 = vand.u32 2147483647, %v637_v26  ;;  %v143_v28 = vsub.f32 1.0, %v139_v24  ;;  %vm157_vm7 = vcmp.lt.s32.totalorder %v637_v26, 0 }
  0x3f   : > { %v159_v29 = vshrl.u32 %v158_v27, 23  ;;  %v162_v37 = vand.u32 8388607, %v155_v33  ;;  %496 = vlog2.f32 %v143_v28  ;;  %vm156_vm8 = vcmp.le.f32.partialorder %v155_v33, 0.7853982 }
  0x41   : > { %v433_v30 = vadd.s32 4294967169, %v159_v29  ;;  %v163_v52 = vor.u32 8388608, %v162_v37 }
  0x43   : > { %v165_v32 = vadd.s32 1, %v433_v30  ;;  %v203_v3 = vshll.u32 %v163_v52, 8 }
  0x45   : > { %vm166_vm0 = vcmp.gt.s32.totalorder %v165_v32, 0 }
  0x46   : > { %v167_v35 = vsel %vm166_vm0, %v165_v32, 0 }
  0x47   : > { %v169_v36 = vand.u32 31, %v167_v35  ;;  %v168_v38 = vshrl.u32 %v167_v35, 5 }
  0x49   : > { %v170_v39 = vsub.s32 32, %v169_v36  ;;  %v172_v41 = vshll.u32 %v568_v40, %v169_v36  ;;  %v175_v43 = vshll.u32 %v569_v42, %v169_v36  ;;  %v178_v45 = vshll.u32 %v570_v44, %v169_v36  ;;  %v497_v37 = vpop.eup %496 }
  0x4a   : > { %v181_v51 = vshll.u32 %v571_v49, %v169_v36  ;;  %v184_v55 = vshll.u32 %v572_v54, %v169_v36  ;;  %vm187_vm1 = vcmp.lt.s32.totalorder %v168_v38, 1  ;;  %vm190_vm2 = vcmp.lt.s32.totalorder %v168_v38, 4 }
  0x4b   : > { %v173_v47 = vshrl.u32 %v569_v42, %v170_v39  ;;  %v176_v48 = vshrl.u32 %v570_v44, %v170_v39  ;;  %v179_v50 = vshrl.u32 %v571_v49, %v170_v39  ;;  %v171_v53 = vshrl.u32 %v568_v40, %v170_v39 }
  0x4c   : > { %v182_v59 = vshrl.u32 %v572_v54, %v170_v39  ;;  %v185_v61 = vshrl.u32 %v573_v60, %v170_v39  ;;  %vm189_vm3 = vcmp.lt.s32.totalorder %v168_v38, 3  ;;  %vm188_vm4 = vcmp.lt.s32.totalorder %v168_v38, 2 }
  0x4d   : > { %v174_v56 = vor.u32 %v173_v47, %v172_v41  ;;  %v177_v57 = vor.u32 %v176_v48, %v175_v43  ;;  %v180_v58 = vor.u32 %v179_v50, %v178_v45  ;;  %v145_v42 = vmul.f32 0.6931472, %v497_v37 }
  0x4e   : > { %v183_v63 = vor.u32 %v182_v59, %v181_v51  ;;  %v186_v1 = vor.u32 %v185_v61, %v184_v55 }
  0x4f   : > { %v192_v0 = vsel %vm190_vm2, %v180_v58, 2102212464  ;;  %v195_v2 = vsel %vm187_vm1, %v174_v56, %v177_v57  ;;  %v191_v4 = vsel %vm187_vm1, %v171_v53, %v174_v56  ;;  %v199_v7 = vsel %vm187_vm1, %v177_v57, %v180_v58 }
  0x50   : > { %v193_v5 = vsel %vm189_vm3, %v177_v57, %v192_v0  ;;  %v196_v6 = vsel %vm190_vm2, %v183_v63, 920167782  ;;  %v200_v9 = vsel %vm190_vm2, %v186_v1, 1326507024  ;;  %v146_v47 = vmul.f32 -2.0, %v145_v42 }
  0x51   : > { %v197_v8 = vsel %vm189_vm3, %v180_v58, %v196_v6  ;;  %v201_v12 = vsel %vm189_vm3, %v183_v63, %v200_v9  ;;  %v194_v13 = vsel %vm188_vm4, %v191_v4, %v193_v5  ;;  %vm247_vm1 = vweird.f32 %v637_v26 }
  0x52   : > { %v198_v11 = vsel %vm188_vm4, %v195_v2, %v197_v8  ;;  %v202_v14 = vsel %vm188_vm4, %v199_v7, %v201_v12  ;;  %v210_v19 = vmul.u32 %v203_v3, %v194_v13  ;;  %498 = vrsqrt.f32 %v146_v47 }
  0x53   : > { %v646_v15 = vmul.u32.u64.low %v203_v3, %v198_v11  ;;  %v647_v16 = vmul.u32.u64.high %v203_v3, %v198_v11, %v646_v15  ;;  %v649_v17 = vmul.u32.u64.low %v203_v3, %v202_v14  ;;  %v650_v18 = vmul.u32.u64.high %v203_v3, %v202_v14, %v649_v17 }
  0x54   : > { %vm149_vm9 = vcmp.eq.f32.partialorder %v146_v47, inf  ;;  %vm151_vm10 = vcmp.eq.f32.partialorder %v146_v47, 0.0  ;;  %v152_v33 = vand.u32 2147483648, %v146_v47 }
  0x55   : > { %v213_v21 = vadd.s32 1, %v647_v16  ;;  %vm212_vm5 = vc.u32 %v650_v18, %v646_v15  ;;  %v211_v36 = vadd.s32 %v646_v15, %v650_v18 }
  0x57   : > { %v214_v22 = vsel %vm212_vm5, %v213_v21, %v647_v16 }
  0x58   : > { %v215_v23 = vadd.s32 %v214_v22, %v210_v19 }
  0x5a   : > { %v216_v25 = vadd.s32 536870912, %v215_v23 }
  0x5c   : > { %v217_v27 = vshrl.u32 %v216_v25, 30  ;;  %v499_v59 = vpop.eup %498 }
  0x5d   : > { %v148_v62 = vmul.f32 %v499_v59, %v146_v47 }
  0x5e   : > { %v218_v29 = vshll.u32 %v217_v27, 30  ;;  %v241_v51 = vsub.s32 4, %v217_v27 }
  0x5f   : > { %v150_v1 = vsel %vm149_vm9, %v146_v47, %v148_v62 }
  0x60   : > { %v219_v30 = vsub.s32 %v215_v23, %v218_v29  ;;  %v242_v54 = vsel %vm157_vm7, %v241_v51, %v217_v27  ;;  %v153_v6 = vsel %vm151_vm10, %v152_v33, %v150_v1 }
  0x61   : > { %v244_v57 = vsel %vm156_vm8, 0, %v242_v54 }
  0x62   : > { %v221_v31 = vsub.s32 0, %v219_v30  ;;  %v352_v58 = vadd.s32 3, %v244_v57  ;;  %v248_v60 = vand.u32 3, %v244_v57 }
  0x64   : > { %v434_v32 = vmin.u32 %v221_v31, %v219_v30  ;;  %v353_v61 = vand.u32 3, %v352_v58  ;;  %vm253_vm11 = vcmp.eq.s32.totalorder %v248_v60, 2  ;;  %vm250_vm13 = vcmp.eq.s32.totalorder %v248_v60, 0 }
  0x65   : > { %vm249_vm15 = vcmp.lt.s32.totalorder %v248_v60, 2 }
  0x66   : > { %v223_v34 = vclz %v434_v32  ;;  %vm358_vm12 = vcmp.eq.s32.totalorder %v353_v61, 2  ;;  %vm355_vm14 = vcmp.eq.s32.totalorder %v353_v61, 0  ;;  %vm354_vm0 = vcmp.lt.s32.totalorder %v353_v61, 2 }
  0x68   : > { %v435_v35 = vadd.s32 4294967294, %v223_v34 }
  0x6a   : > { %vm436_vm6 = vcmp.lt.s32.totalorder %v435_v35, 0 }
  0x6b   : > { %v226_v38 = vsel %vm436_vm6, 0, %v435_v35 }
  0x6c   : > { %v227_v39 = vsub.s32 32, %v226_v38  ;;  %v228_v40 = vshll.u32 %v219_v30, %v226_v38  ;;  %v231_v41 = vsub.s32 4294967266, %v226_v38 }
  0x6e   : > { %v229_v43 = vshrl.u32 %v211_v36, %v227_v39  ;;  %v232_v44 = vadd.s32 127, %v231_v41 }
  0x70   : > { %v230_v45 = vor.u32 %v229_v43, %v228_v40  ;;  %v233_v46 = vshll.u32 %v232_v44, 23 }
  0x72   : > { %v234_v48 = vor.u32 4788187, %v233_v46  ;;  %v237_v49 = vcvt.s32.f32 %v230_v45 }
  0x74   : > { %v235_v50 = vand.u32 2147483647, %v234_v48 }
  0x76   : > { %v238_v52 = vmul.f32 %v237_v49, %v235_v50 }
  0x78   : > { %v239_v53 = vxor.u32 2147483648, %v238_v52 }
  0x7a   : > { %v240_v55 = vsel %vm157_vm7, %v239_v53, %v238_v52 }
  0x7b   : > { %v243_v56 = vsel %vm156_vm8, %v637_v26, %v240_v55 }
  0x7c   : > { %500 = vcosq.f32 %v243_v56 }
  0x7d   : > { %502 = vsinq.f32 %v243_v56 }
  0x86   : > { %v501_v63 = vpop.eup %500 }
  0x87   : > { %v503_v0 = vpop.eup %502  ;;  %v254_v2 = vxor.u32 2147483648, %v501_v63 }
  0x88   : > { %v251_v3 = vxor.u32 2147483648, %v503_v0 }
  0x89   : > { %v255_v4 = vsel %vm253_vm11, %v254_v2, %v503_v0  ;;  %v360_v5 = vsel %vm358_vm12, %v254_v2, %v503_v0 }
  0x8a   : > { %v252_v7 = vsel %vm250_vm13, %v501_v63, %v251_v3  ;;  %v357_v8 = vsel %vm355_vm14, %v501_v63, %v251_v3 }
  0x8b   : > { %v256_v9 = vsel %vm249_vm15, %v252_v7, %v255_v4  ;;  %v361_v10 = vsel %vm354_vm0, %v357_v8, %v360_v5 }
  0x8c   : > { %v257_v11 = vsel %vm247_vm1, nan, %v256_v9  ;;  %v362_v12 = vsel %vm247_vm1, nan, %v361_v10 }
  0x8d   : > { %v258_v13 = vmul.f32 %v257_v11, %v153_v6  ;;  %v363_v26 = vmul.f32 %v362_v12, %v153_v6 }
  0x8f   : > { %364 = vst [vmem:[%s95_s4] sm:$0xff] %v258_v13  ;;  %365 = vst [vmem:[%s95_s4 + $0x8] sm:$0xff] %v363_v26 }
  0x90   : > { %517 = shalt.err (!%p514_p2)
}
  0x91   : > { %s518_s22 = scalar_lea.hbm %s670_s14, 256  ;;  %s522_s25 = scalar_lea.hbm %s713_s1, 512 }
  0x92   : > { %p519_p3 = scmp.ne.s32.totalorder %s670_s14, %s518_s22  ;;  %p523_p8 = scmp.lt.u32.totalorder %s670_s14, %s713_s1 }
  0x93   : > { %p524_p9 = scmp.lt.u32.totalorder %s522_s25, %s518_s22  ;;  %p526_p11 = scmp.lt.u32.totalorder %s518_s22, %s670_s14 }
  0x94   : > { %p520_p4 = pnand %p519_p3, %p626_p5 }
  0x95   : > { %p525_p10 = por %p524_p9, %p523_p8 }
  0x96   : > { %p521_p7 = pneg %p520_p4 }
  0x97   : > { %p527_p12 = por %p526_p11, %p525_p10 }
  0x99   : > { %p528_p13 = pnand %p527_p12, %p521_p7 }
  0x9b   : > { %531 = shalt.err (!%p528_p13)
}
  0x9c   : > { %451 = dma.vmem_to_hbm [thread:$0]  (%p626_p5), %s665_s5, 256, %s670_s14, %s367_s0  }
  0x9d PF: > { %p457_p0 = scmp.ge.s32.totalorder %s566_s11, 2  ;;  %s393_s28 = sand.u32 1, %s554_s8  }
  0x9e   : > { %s394_s29 = scalar_lea.sflag [#allocation4], %s393_s28 }
  0x9f   : > { %p454_p1 = pnand %p457_p0, %p630_p6 }
  0xa1   : > { %549 = dma.done.wait (!%p454_p1), %s394_s29, 256  }
  0xa2   : > { %551 = vsyncadd (!%p454_p1), %s394_s29, 4294967040  ;;  %p12_p2 = scmp.ge.s32.totalorder %s613_s13, 4   ;;  %s716_s8 = smov %s558_s9 }
  0xa3   : > { %s717_s9 = smov %s562_s10  ;;  %s718_s10 = smov %s624_s16 }
  0xa4   : > { %s719_s11 = smov %s613_s13  ;;  %14 = sbr.rel (!%p12_p2) target bundleno = 5 (0x5), region = 56 }
  0xab   :  { %399 = vsyncpa [#allocation4], 1 }
  0xac   :  { %401 = vsyncpa [#allocation4 + $0x1], 1 }

</bundles_post_ra>
